<compile_context>
chip_gen: v7x
topology: tpu7x:2x2x1
jax: 0.10.0
libtpu: 0.0.40
codegen_flags: <defaults>
</compile_context>

<pallas_src>
import functools

import jax
import jax.numpy as jnp
from jax.experimental import pallas as pl
from jax.experimental.pallas import tpu as pltpu


# rock-physics constants (identical to the PyTorch module)
K_Q = 37.0e9
K_C = 21.0e9
K_W = 2.25e9
K_H = 0.04e9
MU_Q = 44.0e9
MU_C = 10.0e9
RHO_Q = 2.65e3
RHO_C = 2.55e3
RHO_W = 1.0e3
RHO_H = 0.1e3

# precomputed reciprocal constants (removes 4 of 5 per-element divides)
INV_K_Q = 1.0 / K_Q
INV_K_C = 1.0 / K_C
INV_K_W = 1.0 / K_W
INV_K_H = 1.0 / K_H


def _round_up(x, m):
    return (x + m - 1) // m * m


# ----------------------------------------------------------------------------
# glue: ft.padding equivalent (replication padding into the PML/pad grid)
# ----------------------------------------------------------------------------
def pad_model(v, nz_orig, nx_orig, nz, nx, nPml, nPad):
    """Crop to (nz_orig, nx_orig), edge-extend to (nz, nx), then edge-pad the
    PML/pad halo — fused into ONE jnp.pad (edge padding composes exactly)."""
    v = v[:nz_orig, :nx_orig].astype(jnp.float32)
    return jnp.pad(
        v,
        ((nPml, (nz - nz_orig) + nPml + nPad), (nPml, (nx - nx_orig) + nPml)),
        mode="edge",
    )  # (nz + 2*nPml + nPad, nx + 2*nPml)


def _pad_model_two_step(v, nz_orig, nx_orig, nz, nx, nPml, nPad):
    """Reference-only: mirrors the original ft.padding structure (two pads)."""
    v = v[:nz_orig, :nx_orig].astype(jnp.float32)
    v = jnp.pad(v, ((0, nz - nz_orig), (0, nx - nx_orig)), mode="edge")
    v = jnp.pad(v, ((nPml, nPml + nPad), (nPml, nPml)), mode="edge")
    return v


# ----------------------------------------------------------------------------
# generation-aware tile plan
# ----------------------------------------------------------------------------
def _vmem_capacity_bytes():
    try:
        return int(pltpu.get_tpu_info().vmem_capacity_bytes)
    except Exception:
        return 64 * 1024 * 1024  # conservative fallback (v7x per-TC VMEM)


def _tile_plan(H, W, *, static_bytes=4):
    """Pick tile_h (multiple of 8, full-W blocks) from the per-generation VMEM
    budget, and the matching vmem_limit_bytes.  No artificial row cap; >= 2
    grid steps enforced so v7x can shard row-tiles across both TensorCores."""
    cap = _vmem_capacity_bytes()
    # tile budget: ~60% of VMEM for live (double-buffered) tiles, capped so the
    # big-VMEM generations (v5e/v6e, 128 MiB) don't over-allocate; v7x -> ~38 MiB.
    budget = min(int(cap * 0.6), 96 * 1024 * 1024)
    vmem_limit = int(min(cap - 16 * 1024 * 1024, 100 * 1024 * 1024))

    # live bytes per tile row: 1 stacked static stream (4 planes) + 3 dynamic
    # f32 inputs + 3 f32 outputs, each double-buffered by the pipeline.
    bytes_per_row = W * (4 * static_bytes + 6 * 4)
    max_tile_h = max(8, (budget // (2 * bytes_per_row)) // 8 * 8)

    H8 = _round_up(H, 8)
    tile_h = min(max_tile_h, H8)

    # guarantee >= 2 grid steps when the grid is tall enough (v7x: 2 TCs).
    if H > 8 and pl.cdiv(H, tile_h) < 2:
        tile_h = max(8, _round_up(pl.cdiv(H, 2), 8))
    return tile_h, vmem_limit


# ----------------------------------------------------------------------------
# Pallas kernel: masked blend + Voigt-Reuss-Hill mixing
# ----------------------------------------------------------------------------
def _vrh_kernel(statics_ref, phi_ref, cc_ref, sw_ref, lam_ref, mu_ref, den_ref):
    # statics_ref: (4, tile_h, W) = [Mask, PHI_ref, CC_ref, SW_ref]
    m = statics_ref[0].astype(jnp.float32)
    phir = statics_ref[1].astype(jnp.float32)
    ccr = statics_ref[2].astype(jnp.float32)
    swr = statics_ref[3].astype(jnp.float32)
    one_m = 1.0 - m

    phi = m * phi_ref[...] + one_m * phir
    cc = m * cc_ref[...] + one_m * ccr
    sw = m * sw_ref[...] + one_m * swr

    one_phi = 1.0 - phi
    one_cc = 1.0 - cc
    one_sw = 1.0 - sw

    # Voigt average of the bulk modulus
    kv = one_phi * (K_C * cc + K_Q * one_cc) + phi * (K_W * sw + K_H * one_sw)
    # Reuss average (constant divides -> reciprocal multiplies; keep the single
    # data-dependent divide exact: kernel is DMA-bound, EUP work is free slack)
    kr_1 = (one_phi * (cc * INV_K_C + one_cc * INV_K_Q)
            + phi * (sw * INV_K_W + one_sw * INV_K_H))
    kr = 1.0 / kr_1
    k = 0.5 * (kv + kr)

    # shear modulus: Voigt only (mur = 0 in the original module)
    mu = 0.5 * (one_phi * (MU_C * cc + MU_Q * one_cc))

    # density
    rho_f = RHO_W * sw + RHO_H * one_sw
    rho_s = RHO_C * cc + RHO_Q * one_cc
    den = rho_f * phi + rho_s * one_phi

    lam_ref[...] = (k - (2.0 / 3.0) * mu) * 1e-6
    mu_ref[...] = mu * 1e-6
    den_ref[...] = den


# ----------------------------------------------------------------------------
# jitted forward: fused edge-pad (XLA) + row-tiled Pallas call — no crop
# ----------------------------------------------------------------------------
@functools.partial(
    jax.jit,
    static_argnames=("nz_orig", "nx_orig", "nz", "nx", "nPml", "nPad",
                     "tile_h", "vmem_limit"))
def _forward_impl(PHI, CC, SW, statics, *, nz_orig, nx_orig, nz, nx, nPml, nPad,
                  tile_h, vmem_limit):
    _, H, W = statics.shape

    def prep(v):
        return pad_model(v, nz_orig, nx_orig, nz, nx, nPml, nPad)

    phi, cc, sw = prep(PHI), prep(CC), prep(SW)

    blk = pl.BlockSpec((tile_h, W), lambda i: (i, 0))          # full-width rows
    blk_s = pl.BlockSpec((4, tile_h, W), lambda i: (0, i, 0))  # stacked statics
    out = jax.ShapeDtypeStruct((H, W), jnp.float32)

    lam, mu, den = pl.pallas_call(
        _vrh_kernel,
        grid=(pl.cdiv(H, tile_h),),
        in_specs=[blk_s, blk, blk, blk],
        out_specs=[blk, blk, blk],
        out_shape=(out, out, out),
        compiler_params=pltpu.CompilerParams(
            dimension_semantics=("parallel",),
            vmem_limit_bytes=vmem_limit,
        ),
    )(statics, phi, cc, sw)

    return lam, mu, den


# ----------------------------------------------------------------------------
# Module-equivalent wrapper
# ----------------------------------------------------------------------------
class FWIRockPhysicsVRH:
    def __init__(self, PHI, CC, SW, Stf, opt, Mask=None,
                 static_dtype=jnp.float32):
        # static_dtype=jnp.bfloat16 cuts the static-stream HBM traffic ~in half;
        # default float32 keeps exact parity with the PyTorch module.
        self.nz, self.nx = opt["nz"], opt["nx"]
        self.nz_orig, self.nx_orig = opt["nz_orig"], opt["nx_orig"]
        self.nPml, self.nPad = opt["nPml"], opt["nPad"]
        self.para_fname = opt.get("para_fname")
        self.PHI, self.CC, self.SW = PHI, CC, SW
        self.Stf = Stf

        self.H = self.nz + 2 * self.nPml + self.nPad
        self.W = self.nx + 2 * self.nPml
        self.tile_h, self.vmem_limit = _tile_plan(
            self.H, self.W, static_bytes=jnp.dtype(static_dtype).itemsize)

        pad = lambda v: pad_model(v, self.nz_orig, self.nx_orig,
                                  self.nz, self.nx, self.nPml, self.nPad)
        # register_buffer equivalents: reference (background) models
        self.PHI_ref = pad(PHI)
        self.CC_ref = pad(CC)
        self.SW_ref = pad(SW)

        self.Mask = (jnp.ones((self.H, self.W), jnp.float32)
                     if Mask is None else Mask.astype(jnp.float32))

        # static streams stacked ONCE at init -> single DMA stream per step
        self._statics = jnp.stack(
            [self.Mask, self.PHI_ref, self.CC_ref, self.SW_ref]
        ).astype(static_dtype)

    def forward(self, Shot_ids, ngpu=1):
        Lambda, Mu, Den = _forward_impl(
            self.PHI, self.CC, self.SW, self._statics,
            nz_orig=self.nz_orig, nx_orig=self.nx_orig,
            nz=self.nz, nx=self.nx, nPml=self.nPml, nPad=self.nPad,
            tile_h=self.tile_h, vmem_limit=self.vmem_limit)
        # TODO(synk): FWIFunction.apply -> fwi_ops.backward is a CUDA elastic
        # wave-equation propagator + adjoint (libCUFD.cu); no Pallas equivalent.
        # Return the Lame parameters / density the propagator would consume.
        return Lambda, Mu, Den


# pure-JAX reference for correctness check
def _ref(mask, phi, cc, sw, phir, ccr, swr):
    PHI = mask * phi + (1.0 - mask) * phir
    CC = mask * cc + (1.0 - mask) * ccr
    SW = mask * sw + (1.0 - mask) * swr
    kv = (1 - PHI) * (K_C * CC + K_Q * (1 - CC)) + PHI * (K_W * SW + K_H * (1 - SW))
    kr_1 = (1 - PHI) * (CC / K_C + (1 - CC) / K_Q) + PHI * (SW / K_W + (1 - SW) / K_H)
    kr = 1.0 / kr_1
    k = 0.5 * (kv + kr)
    Mu = 0.5 * ((1 - PHI) * (MU_C * CC + MU_Q * (1 - CC)))
    rho_f = RHO_W * SW + RHO_H * (1 - SW)
    rho_s = RHO_C * CC + RHO_Q * (1 - CC)
    Den = rho_f * PHI + rho_s * (1 - PHI)
    Lambda = (k - 2.0 / 3.0 * Mu) / 1e6
    Mu = Mu / 1e6
    return Lambda, Mu, Den


if __name__ == "__main__":
    key = jax.random.PRNGKey(0)
    k1, k2, k3, k4, k5 = jax.random.split(key, 5)

    opt = dict(nz=16, nx=16, nz_orig=16, nx_orig=16, nPml=8, nPad=8,
               para_fname="unused.json")
    nz_o, nx_o = opt["nz_orig"], opt["nx_orig"]

    # physically-plausible deterministic rock-physics models
    PHI = 0.05 + 0.30 * jax.random.uniform(k1, (nz_o, nx_o), jnp.float32)   # porosity
    CC = 0.05 + 0.50 * jax.random.uniform(k2, (nz_o, nx_o), jnp.float32)    # clay content
    SW = 0.20 + 0.80 * jax.random.uniform(k3, (nz_o, nx_o), jnp.float32)    # water saturation
    Stf = jax.random.normal(k4, (2, 64), jnp.float32)                       # source time function
    H = opt["nz"] + 2 * opt["nPml"] + opt["nPad"]
    W = opt["nx"] + 2 * opt["nPml"]
    Mask = (jax.random.uniform(k5, (H, W), jnp.float32) > 0.3).astype(jnp.float32)

    model = FWIRockPhysicsVRH(PHI, CC, SW, Stf, opt, Mask=Mask)
    Shot_ids = jnp.arange(2, dtype=jnp.int32)

    Lambda, Mu, Den = model.forward(Shot_ids)
    jax.block_until_ready((Lambda, Mu, Den))

    # verify against pure-JAX reference (uses the original two-step ft.padding
    # structure, so this also validates the fused single-pad path)
    pad2 = lambda v: _pad_model_two_step(v, opt["nz_orig"], opt["nx_orig"],
                                         opt["nz"], opt["nx"],
                                         opt["nPml"], opt["nPad"])
    lam_r, mu_r, den_r = _ref(Mask, pad2(PHI), pad2(CC), pad2(SW),
                              model.PHI_ref, model.CC_ref, model.SW_ref)

    assert Lambda.shape == (H, W) and Mu.shape == (H, W) and Den.shape == (H, W)
    assert jnp.allclose(Lambda, lam_r, rtol=1e-4, atol=1e-2)
    assert jnp.allclose(Mu, mu_r, rtol=1e-4, atol=1e-2)
    assert jnp.allclose(Den, den_r, rtol=1e-5, atol=1e-3)

    print("KERNEL_OK")
</pallas_src>

<mosaic_0001>
module attributes {stable_mosaic.version = 11 : i64} {
  func.func @_vrh_kernel(%arg0: i32, %arg1: memref<4x24x32xf32, #tpu.memory_space<vmem>>, %arg2: memref<24x32xf32, #tpu.memory_space<vmem>>, %arg3: memref<24x32xf32, #tpu.memory_space<vmem>>, %arg4: memref<24x32xf32, #tpu.memory_space<vmem>>, %arg5: memref<24x32xf32, #tpu.memory_space<vmem>>, %arg6: memref<24x32xf32, #tpu.memory_space<vmem>>, %arg7: memref<24x32xf32, #tpu.memory_space<vmem>>) attributes {dimension_semantics = [#tpu.dimension_semantics<parallel>], iteration_bounds = array<i64: 2>, scalar_prefetch = 0 : i64, scratch_operands = 0 : i64, tpu.core_type = #tpu.core_type<tc>, window_params = [{transform_indices = @transform_0, window_bounds = array<i64: 4, 24, 32>}, {transform_indices = @transform_1, window_bounds = array<i64: 24, 32>}, {transform_indices = @transform_2, window_bounds = array<i64: 24, 32>}, {transform_indices = @transform_3, window_bounds = array<i64: 24, 32>}, {transform_indices = @transform_4, window_bounds = array<i64: 24, 32>}, {transform_indices = @transform_5, window_bounds = array<i64: 24, 32>}, {transform_indices = @transform_6, window_bounds = array<i64: 24, 32>}]} {
    %c0 = arith.constant 0 : index
    %c0_0 = arith.constant 0 : index
    %c0_1 = arith.constant 0 : index
    %0 = vector.load %arg1[%c0, %c0_0, %c0_1] : memref<4x24x32xf32, #tpu.memory_space<vmem>>, vector<1x24x32xf32>
    %1 = vector.shape_cast %0 : vector<1x24x32xf32> to vector<24x32xf32>
    %c1 = arith.constant 1 : index
    %c0_2 = arith.constant 0 : index
    %c0_3 = arith.constant 0 : index
    %2 = vector.load %arg1[%c1, %c0_2, %c0_3] : memref<4x24x32xf32, #tpu.memory_space<vmem>>, vector<1x24x32xf32>
    %3 = vector.shape_cast %2 : vector<1x24x32xf32> to vector<24x32xf32>
    %c2 = arith.constant 2 : index
    %c0_4 = arith.constant 0 : index
    %c0_5 = arith.constant 0 : index
    %4 = vector.load %arg1[%c2, %c0_4, %c0_5] : memref<4x24x32xf32, #tpu.memory_space<vmem>>, vector<1x24x32xf32>
    %5 = vector.shape_cast %4 : vector<1x24x32xf32> to vector<24x32xf32>
    %c3 = arith.constant 3 : index
    %c0_6 = arith.constant 0 : index
    %c0_7 = arith.constant 0 : index
    %6 = vector.load %arg1[%c3, %c0_6, %c0_7] : memref<4x24x32xf32, #tpu.memory_space<vmem>>, vector<1x24x32xf32>
    %7 = vector.shape_cast %6 : vector<1x24x32xf32> to vector<24x32xf32>
    %cst = arith.constant 1.000000e+00 : f32
    %8 = vector.broadcast %cst : f32 to vector<24x32xf32>
    %9 = arith.subf %8, %1 : vector<24x32xf32>
    %c0_8 = arith.constant 0 : index
    %c0_9 = arith.constant 0 : index
    %10 = vector.load %arg2[%c0_8, %c0_9] : memref<24x32xf32, #tpu.memory_space<vmem>>, vector<24x32xf32>
    %11 = arith.mulf %1, %10 : vector<24x32xf32>
    %12 = arith.mulf %9, %3 : vector<24x32xf32>
    %13 = arith.addf %11, %12 : vector<24x32xf32>
    %c0_10 = arith.constant 0 : index
    %c0_11 = arith.constant 0 : index
    %14 = vector.load %arg3[%c0_10, %c0_11] : memref<24x32xf32, #tpu.memory_space<vmem>>, vector<24x32xf32>
    %15 = arith.mulf %1, %14 : vector<24x32xf32>
    %16 = arith.mulf %9, %5 : vector<24x32xf32>
    %17 = arith.addf %15, %16 : vector<24x32xf32>
    %c0_12 = arith.constant 0 : index
    %c0_13 = arith.constant 0 : index
    %18 = vector.load %arg4[%c0_12, %c0_13] : memref<24x32xf32, #tpu.memory_space<vmem>>, vector<24x32xf32>
    %19 = arith.mulf %1, %18 : vector<24x32xf32>
    %20 = arith.mulf %9, %7 : vector<24x32xf32>
    %21 = arith.addf %19, %20 : vector<24x32xf32>
    %cst_14 = arith.constant 1.000000e+00 : f32
    %22 = vector.broadcast %cst_14 : f32 to vector<24x32xf32>
    %23 = arith.subf %22, %13 : vector<24x32xf32>
    %cst_15 = arith.constant 1.000000e+00 : f32
    %24 = vector.broadcast %cst_15 : f32 to vector<24x32xf32>
    %25 = arith.subf %24, %17 : vector<24x32xf32>
    %cst_16 = arith.constant 1.000000e+00 : f32
    %26 = vector.broadcast %cst_16 : f32 to vector<24x32xf32>
    %27 = arith.subf %26, %21 : vector<24x32xf32>
    %cst_17 = arith.constant 2.100000e+10 : f32
    %28 = vector.broadcast %cst_17 : f32 to vector<24x32xf32>
    %29 = arith.mulf %28, %17 : vector<24x32xf32>
    %cst_18 = arith.constant 3.700000e+10 : f32
    %30 = vector.broadcast %cst_18 : f32 to vector<24x32xf32>
    %31 = arith.mulf %30, %25 : vector<24x32xf32>
    %32 = arith.addf %29, %31 : vector<24x32xf32>
    %33 = arith.mulf %23, %32 : vector<24x32xf32>
    %cst_19 = arith.constant 2.250000e+09 : f32
    %34 = vector.broadcast %cst_19 : f32 to vector<24x32xf32>
    %35 = arith.mulf %34, %21 : vector<24x32xf32>
    %cst_20 = arith.constant 4.000000e+07 : f32
    %36 = vector.broadcast %cst_20 : f32 to vector<24x32xf32>
    %37 = arith.mulf %36, %27 : vector<24x32xf32>
    %38 = arith.addf %35, %37 : vector<24x32xf32>
    %39 = arith.mulf %13, %38 : vector<24x32xf32>
    %40 = arith.addf %33, %39 : vector<24x32xf32>
    %cst_21 = arith.constant 4.76190476E-11 : f32
    %41 = vector.broadcast %cst_21 : f32 to vector<24x32xf32>
    %42 = arith.mulf %17, %41 : vector<24x32xf32>
    %cst_22 = arith.constant 2.70270265E-11 : f32
    %43 = vector.broadcast %cst_22 : f32 to vector<24x32xf32>
    %44 = arith.mulf %25, %43 : vector<24x32xf32>
    %45 = arith.addf %42, %44 : vector<24x32xf32>
    %46 = arith.mulf %23, %45 : vector<24x32xf32>
    %cst_23 = arith.constant 4.44444453E-10 : f32
    %47 = vector.broadcast %cst_23 : f32 to vector<24x32xf32>
    %48 = arith.mulf %21, %47 : vector<24x32xf32>
    %cst_24 = arith.constant 2.500000e-08 : f32
    %49 = vector.broadcast %cst_24 : f32 to vector<24x32xf32>
    %50 = arith.mulf %27, %49 : vector<24x32xf32>
    %51 = arith.addf %48, %50 : vector<24x32xf32>
    %52 = arith.mulf %13, %51 : vector<24x32xf32>
    %53 = arith.addf %46, %52 : vector<24x32xf32>
    %cst_25 = arith.constant 1.000000e+00 : f32
    %54 = vector.broadcast %cst_25 : f32 to vector<24x32xf32>
    %55 = arith.divf %54, %53 : vector<24x32xf32>
    %56 = arith.addf %40, %55 : vector<24x32xf32>
    %cst_26 = arith.constant 5.000000e-01 : f32
    %57 = vector.broadcast %cst_26 : f32 to vector<24x32xf32>
    %58 = arith.mulf %57, %56 : vector<24x32xf32>
    %cst_27 = arith.constant 1.000000e+10 : f32
    %59 = vector.broadcast %cst_27 : f32 to vector<24x32xf32>
    %60 = arith.mulf %59, %17 : vector<24x32xf32>
    %cst_28 = arith.constant 4.400000e+10 : f32
    %61 = vector.broadcast %cst_28 : f32 to vector<24x32xf32>
    %62 = arith.mulf %61, %25 : vector<24x32xf32>
    %63 = arith.addf %60, %62 : vector<24x32xf32>
    %64 = arith.mulf %23, %63 : vector<24x32xf32>
    %cst_29 = arith.constant 5.000000e-01 : f32
    %65 = vector.broadcast %cst_29 : f32 to vector<24x32xf32>
    %66 = arith.mulf %65, %64 : vector<24x32xf32>
    %cst_30 = arith.constant 1.000000e+03 : f32
    %67 = vector.broadcast %cst_30 : f32 to vector<24x32xf32>
    %68 = arith.mulf %67, %21 : vector<24x32xf32>
    %cst_31 = arith.constant 1.000000e+02 : f32
    %69 = vector.broadcast %cst_31 : f32 to vector<24x32xf32>
    %70 = arith.mulf %69, %27 : vector<24x32xf32>
    %71 = arith.addf %68, %70 : vector<24x32xf32>
    %cst_32 = arith.constant 2.550000e+03 : f32
    %72 = vector.broadcast %cst_32 : f32 to vector<24x32xf32>
    %73 = arith.mulf %72, %17 : vector<24x32xf32>
    %cst_33 = arith.constant 2.650000e+03 : f32
    %74 = vector.broadcast %cst_33 : f32 to vector<24x32xf32>
    %75 = arith.mulf %74, %25 : vector<24x32xf32>
    %76 = arith.addf %73, %75 : vector<24x32xf32>
    %77 = arith.mulf %71, %13 : vector<24x32xf32>
    %78 = arith.mulf %76, %23 : vector<24x32xf32>
    %79 = arith.addf %77, %78 : vector<24x32xf32>
    %cst_34 = arith.constant 0.666666686 : f32
    %80 = vector.broadcast %cst_34 : f32 to vector<24x32xf32>
    %81 = arith.mulf %80, %66 : vector<24x32xf32>
    %82 = arith.subf %58, %81 : vector<24x32xf32>
    %cst_35 = arith.constant 9.99999997E-7 : f32
    %83 = vector.broadcast %cst_35 : f32 to vector<24x32xf32>
    %84 = arith.mulf %82, %83 : vector<24x32xf32>
    %c0_36 = arith.constant 0 : index
    %c0_37 = arith.constant 0 : index
    %85 = vector.load %arg5[%c0_36, %c0_37] : memref<24x32xf32, #tpu.memory_space<vmem>>, vector<24x32xf32>
    tpu.vector_store %arg5[%c0_36, %c0_37], %84 {strides = array<i32>} : memref<24x32xf32, #tpu.memory_space<vmem>>, vector<24x32xf32>,
    %cst_38 = arith.constant 9.99999997E-7 : f32
    %86 = vector.broadcast %cst_38 : f32 to vector<24x32xf32>
    %87 = arith.mulf %66, %86 : vector<24x32xf32>
    %c0_39 = arith.constant 0 : index
    %c0_40 = arith.constant 0 : index
    %88 = vector.load %arg6[%c0_39, %c0_40] : memref<24x32xf32, #tpu.memory_space<vmem>>, vector<24x32xf32>
    tpu.vector_store %arg6[%c0_39, %c0_40], %87 {strides = array<i32>} : memref<24x32xf32, #tpu.memory_space<vmem>>, vector<24x32xf32>,
    %c0_41 = arith.constant 0 : index
    %c0_42 = arith.constant 0 : index
    %89 = vector.load %arg7[%c0_41, %c0_42] : memref<24x32xf32, #tpu.memory_space<vmem>>, vector<24x32xf32>
    tpu.vector_store %arg7[%c0_41, %c0_42], %79 {strides = array<i32>} : memref<24x32xf32, #tpu.memory_space<vmem>>, vector<24x32xf32>,
    return
  }
  func.func @transform_0(%arg0: i32) -> (i32, i32, i32) {
    %c0_i32 = arith.constant 0 : i32
    %c0_i32_0 = arith.constant 0 : i32
    %c0_i32_1 = arith.constant 0 : i32
    return %c0_i32, %arg0, %c0_i32_0 : i32, i32, i32
  }
  func.func @transform_1(%arg0: i32) -> (i32, i32) {
    %c0_i32 = arith.constant 0 : i32
    %c0_i32_0 = arith.constant 0 : i32
    return %arg0, %c0_i32 : i32, i32
  }
  func.func @transform_2(%arg0: i32) -> (i32, i32) {
    %c0_i32 = arith.constant 0 : i32
    %c0_i32_0 = arith.constant 0 : i32
    return %arg0, %c0_i32 : i32, i32
  }
  func.func @transform_3(%arg0: i32) -> (i32, i32) {
    %c0_i32 = arith.constant 0 : i32
    %c0_i32_0 = arith.constant 0 : i32
    return %arg0, %c0_i32 : i32, i32
  }
  func.func @transform_4(%arg0: i32) -> (i32, i32) {
    %c0_i32 = arith.constant 0 : i32
    %c0_i32_0 = arith.constant 0 : i32
    return %arg0, %c0_i32 : i32, i32
  }
  func.func @transform_5(%arg0: i32) -> (i32, i32) {
    %c0_i32 = arith.constant 0 : i32
    %c0_i32_0 = arith.constant 0 : i32
    return %arg0, %c0_i32 : i32, i32
  }
  func.func @transform_6(%arg0: i32) -> (i32, i32) {
    %c0_i32 = arith.constant 0 : i32
    %c0_i32_0 = arith.constant 0 : i32
    return %arg0, %c0_i32 : i32, i32
  }
}

</mosaic_0001>

<bundles_post_ra>
// kernel: _forward_impl.1
= control target key start
LH: loop header
LB: loop body
LE: loop exit
PB: predicated region body
PF: predicated region fallthrough
CT: control target
= control target key end

     0   :  { %s2170_s21 = smov 0   ;;  %s2172_s22 = smov 0   ;;  %s2552_s0 = inlined_call_operand.vmem [shape: f32[4,40,32], index: 0, kind: input, shape index: {}]   ;;  %s2553_s1 = inlined_call_operand.vmem [shape: f32[40,32], index: 1, kind: input, shape index: {}]   ;;  %s2554_s2 = inlined_call_operand.vmem [shape: f32[40,32], index: 2, kind: input, shape index: {}]   ;;  %s2555_s3 = inlined_call_operand.vmem [shape: f32[40,32], index: 3, kind: input, shape index: {}]   ;;  %s2556_s4 = inlined_call_operand.vmem [shape: f32[40,32], index: 4, kind: output, shape index: {0}]   ;;  %s2557_s5 = inlined_call_operand.vmem [shape: f32[40,32], index: 5, kind: output, shape index: {1}]   ;;  %s2558_s6 = inlined_call_operand.vmem [shape: f32[40,32], index: 6, kind: output, shape index: {2}]  }
   0x1   :  { %s2174_s23 = smov 0  }
   0x2 LB: > { %s2186_s24 = sadd.s32 4294967295, %s2005_s23   ;;  %s2189_s25 = sadd.s32 1, %s2005_s23   ;;  %s2005_s23 = sphi %s2174_s23, %s2567_s23   ;;  %s2001_s22 = sphi %s2172_s22, %s2566_s22   ;;  %s1997_s21 = sphi %s2170_s21, %s2565_s21  }
   0x3   : > { %s21_s26 = ssub.s32 %s2005_s23, %s2189_s25  ;;  %s24_s27 = sadd.s32 1, %s2001_s22 }
   0x4   : > { %p22_p0 = scmp.eq.s32.totalorder %s21_s26, 0  ;;  %p31_p1 = scmp.ne.s32.totalorder %s2001_s22, %s1997_s21 }
   0x5   : > { %p32_p2 = scmp.eq.s32.totalorder %s2005_s23, 0  ;;  %p139_p3 = scmp.eq.s32.totalorder %s2186_s24, 1 }
   0x6   : > { %s2199_s28 = scalar_select %p22_p0, %s2001_s22, %s24_s27  }
   0x7   : > { %p33_p4 = por %p32_p2, %p31_p1  ;;  %p2201_p5 = por %p139_p3, %p31_p1 }
   0x8   : > { %p1486_p6 = scmp.ge.s32.totalorder %s2005_s23, 2 }
   0xa   : > { %213 = sbr.rel (%p1486_p6) target bundleno = 85 (0x55), region = 16 }
  0x11   : > { %216 = sbr.rel (!%p33_p4) target bundleno = 85 (0x55), region = 20  ;;  %s218_s30 = sand.u32 (%p33_p4), 1, %s2001_s22  }
  0x12   : > { %s221_s7 = smul.u32 (%p33_p4), 3, %s2005_s23 }
  0x13   : > { %s1546_s8 = smul.u32 (%p33_p4), 96, %s218_s30 }
  0x14   : > { %s222_s9 = ssub.s32 (%p33_p4), 5, %s221_s7  ;;  %s1542_s10 = smul.u32 (%p33_p4), 24, %s2005_s23 }
  0x15   : > { %p223_p7 = scmp.lt.s32.totalorder (%p33_p4), %s222_s9, 3  ;;  %s2217_s15 = scalar_lea.vmem (%p33_p4), [#allocation2], %s1546_s8  }
  0x16   : > { %s2212_s13 = scalar_lea.vmem (%p33_p4), %s2552_s0, %s1542_s10  }
  0x18   : > { %s2569_s9 = smov (!%p223_p7, %s222_s9), 3 }
  0x19   : > { %s1487_s14 = sshll.u32 %s2569_s9, 9 }
  0x1a   : > { %p1490_p8 = scmp.eq.s32.totalorder %s1487_s14, 0 }
  0x1b   : > { %1833 = sdivrem.u32 (!%p1490_p8), %s2569_s9, 3 }
  0x1c   : > { %231 = sbr.rel (%p1490_p8) target bundleno = 85 (0x55), region = 24 }
  0x24   : > { %s2220_s16 = spop.drf %1833 }
  0x25   : > { %p1491_p9 = scmp.le.s32.totalorder %s2220_s16, 0 }
  0x26   : > { %s2560_s17 = smov (!%p1491_p9), %s2217_s15  ;;  %s2561_s18 = smov (!%p1491_p9), %s2212_s13 }
  0x27   : > { %1320 = sbr.rel (%p1491_p9) target bundleno = 56 (0x38), region = 341  ;;  %s2229_s19 = smov (!%p1491_p9), 0  }
  0x28   : > { %s2231_s20 = smov (!%p1491_p9), 0  }
  0x2e LB: >> { %v323_v0 = vld [vmem:[%s2013_s18] sm:$0xff]  ;;  %v325_v1 = vld [vmem:[%s2013_s18 + $0x8] sm:$0xff]  ;;  %v327_v2 = vld [vmem:[%s2013_s18 + $0x10] sm:$0xff]  ;;  %s347_s26 = sadd.s32 1, %s2017_s19  ;;  %s317_s20 = sadd.s32 1, %s2021_s20   ;;  %s2021_s20 = sphi %s2231_s20, %s317_s20   ;;  %s2017_s19 = sphi %s2229_s19, %s2562_s19   ;;  %s2013_s18 = sphi %s2561_s18, %s352_s18   ;;  %s2009_s17 = sphi %s2560_s17, %s353_s17  }
  0x2f   : >> { %324 = vst [vmem:[%s2009_s17] sm:$0xff] %v323_v0  ;;  %326 = vst [vmem:[%s2009_s17 + $0x8] sm:$0xff] %v325_v1  ;;  %v329_v3 = vld [vmem:[%s2013_s18 + $0x28] sm:$0xff]  ;;  %v331_v4 = vld [vmem:[%s2013_s18 + $0x30] sm:$0xff]  ;;  %p348_p10 = scmp.ge.s32.totalorder %s347_s26, %s2220_s16  ;;  %p316_p11 = scmp.ge.s32.totalorder %s317_s20, %s2220_s16 }
  0x30   : >> { %328 = vst [vmem:[%s2009_s17 + $0x10] sm:$0xff] %v327_v2  ;;  %v333_v5 = vld [vmem:[%s2013_s18 + $0x38] sm:$0xff]  ;;  %330 = vst [vmem:[%s2009_s17 + $0x18] sm:$0xff] %v329_v3  ;;  %v335_v6 = vld [vmem:[%s2013_s18 + $0x50] sm:$0xff] }
  0x31   : >> { %332 = vst [vmem:[%s2009_s17 + $0x20] sm:$0xff] %v331_v4  ;;  %334 = vst [vmem:[%s2009_s17 + $0x28] sm:$0xff] %v333_v5  ;;  %v337_v7 = vld [vmem:[%s2013_s18 + $0x58] sm:$0xff]  ;;  %v339_v8 = vld [vmem:[%s2013_s18 + $0x60] sm:$0xff]  ;;  %s2571_s26 = smov (%p348_p10, %s347_s26), 0  ;;  %319 = sbr.rel (!%p316_p11) target bundleno = 46 (0x2e), region = 347 }
  0x32   : >> { %336 = vst [vmem:[%s2009_s17 + $0x30] sm:$0xff] %v335_v6  ;;  %338 = vst [vmem:[%s2009_s17 + $0x38] sm:$0xff] %v337_v7  ;;  %v341_v9 = vld [vmem:[%s2013_s18 + $0x78] sm:$0xff]  ;;  %v343_v10 = vld [vmem:[%s2013_s18 + $0x80] sm:$0xff]  ;;  %s350_s27 = smul.u32 24, %s2571_s26  ;;  %s2562_s19 = smov %s2571_s26 }
  0x33   : >> { %340 = vst [vmem:[%s2009_s17 + $0x40] sm:$0xff] %v339_v8  ;;  %v345_v11 = vld [vmem:[%s2013_s18 + $0x88] sm:$0xff]  ;;  %342 = vst [vmem:[%s2009_s17 + $0x48] sm:$0xff] %v341_v9 }
  0x34   : >> { %344 = vst [vmem:[%s2009_s17 + $0x50] sm:$0xff] %v343_v10  ;;  %346 = vst [vmem:[%s2009_s17 + $0x58] sm:$0xff] %v345_v11  ;;  %s352_s18 = scalar_lea.vmem %s2212_s13, %s350_s27   ;;  %s353_s17 = scalar_lea.vmem %s2217_s15, %s350_s27 [#allocation2]  }
  0x38 PF: > { %1835 = sdivrem.u32 %s2569_s9, 3 }
  0x39   : > { %s1492_s30 = smul.u32 24, %s2220_s16 }
  0x3b   : > { %s2255_s7 = scalar_lea.vmem %s2212_s13, %s1492_s30   ;;  %s2258_s8 = scalar_lea.vmem %s2217_s15, %s1492_s30 [#allocation2]  }
  0x41   : > { %s2260_s10 = spop.drf %1835 }
  0x42   : > { %p1494_p12 = scmp.le.s32.totalorder %s2260_s10, 0 }
  0x43   : > { %s2563_s11 = smov (!%p1494_p12), %s2258_s8  ;;  %s2564_s12 = smov (!%p1494_p12), %s2255_s7 }
  0x44   : > { %1334 = sbr.rel (%p1494_p12) target bundleno = 85 (0x55), region = 352  ;;  %s2031_s14 = smov (!%p1494_p12), 0  }
  0x45   : > { %s2035_s17 = smov (!%p1494_p12), 0  }
  0x4b LB: >> { %v370_v12 = vld [vmem:[%s2029_s12] sm:$0xff]  ;;  %v372_v13 = vld [vmem:[%s2029_s12 + $0x28] sm:$0xff]  ;;  %v374_v14 = vld [vmem:[%s2029_s12 + $0x50] sm:$0xff]  ;;  %s378_s9 = sadd.s32 1, %s2033_s14  ;;  %s364_s17 = sadd.s32 1, %s2037_s17   ;;  %s2037_s17 = sphi %s2035_s17, %s364_s17   ;;  %s2033_s14 = sphi %s2031_s14, %s2032_s14   ;;  %s2029_s12 = sphi %s2564_s12, %s383_s12   ;;  %s2025_s11 = sphi %s2563_s11, %s384_s11  }
  0x4c   : >> { %371 = vst [vmem:[%s2025_s11] sm:$0xff] %v370_v12  ;;  %373 = vst [vmem:[%s2025_s11 + $0x18] sm:$0xff] %v372_v13  ;;  %v376_v15 = vld [vmem:[%s2029_s12 + $0x78] sm:$0xff]  ;;  %p379_p13 = scmp.ge.s32.totalorder %s378_s9, %s2260_s10  ;;  %p363_p0 = scmp.ge.s32.totalorder %s364_s17, %s2260_s10 }
  0x4d   : >> { %375 = vst [vmem:[%s2025_s11 + $0x30] sm:$0xff] %v374_v14  ;;  %377 = vst [vmem:[%s2025_s11 + $0x48] sm:$0xff] %v376_v15 }
  0x4e   : >> { %s2573_s9 = smov (%p379_p13, %s378_s9), 0  ;;  %366 = sbr.rel (!%p363_p0) target bundleno = 75 (0x4b), region = 358 }
  0x4f   : >> { %s1495_s13 = sshll.u32 %s2573_s9, 3  ;;  %s2032_s14 = smov %s2573_s9  }
  0x50   : >> { %s383_s12 = scalar_lea.vmem %s2255_s7, %s1495_s13   ;;  %s384_s11 = scalar_lea.vmem %s2258_s8, %s1495_s13 [#allocation2]  }
  0x55 PF: > { %p1497_p1 = scmp.ge.s32.totalorder %s2005_s23, 1  ;;  %p440_p2 = scmp.lt.s32.totalorder %s2005_s23, 3 }
  0x57   : > { %p441_p3 = pnand %p1497_p1, %p440_p2 }
  0x58   : > { %s447_s15 = sand.u32 (!%p441_p3), 1, %s1997_s21   ;;  %s2283_s16 = smul.u32 (!%p441_p3), 3, %s2186_s24  ;;  %vm752_vm0 = vcmask (!%p441_p3), 261120  }
  0x59   : > { %444 = sbr.rel (%p441_p3) target bundleno = 347 (0x15b), region = 84 }
  0x5a   : > { %s1547_s18 = smul.u32 (!%p441_p3), 96, %s447_s15  ;;  %p520_p4 = scmp.lt.s32.totalorder (!%p441_p3), %s2283_s16, 4 }
  0x5b   : > { %s2395_s17 = smul.u32 (!%p441_p3), 24, %s447_s15 }
  0x5c   : > { %s2288_s19 = scalar_lea.vmem (!%p441_p3), [#allocation2], %s1547_s18 }
  0x5d   : > { %v572_v16 = vld [vmem:[%s2288_s19] sm:$0xff] (!%p441_p3)  ;;  %v1501_v17 = vld [vmem:[%s2288_s19 + $0x18] sm:$0xff] (!%p441_p3)  ;;  %v1504_v18 = vld [vmem:[%s2288_s19 + $0x30] sm:$0xff] (!%p441_p3)  ;;  %s2418_s21 = scalar_lea.vmem (!%p441_p3), [#allocation4], %s2395_s17   ;;  %s2444_s9 = scalar_lea.vmem (!%p441_p3), [#allocation5], %s2395_s17  }
  0x5e   : > { %v1507_v19 = vld [vmem:[%s2288_s19 + $0x48] sm:$0xff] (!%p441_p3)  ;;  %v587_v20 = vsub.f32 (!%p441_p3), 1.0, %v572_v16  ;;  %v1502_v22 = vld [vmem:[%s2288_s19 + $0x20] sm:$0xff] (!%p441_p3)  ;;  %v1505_v23 = vld [vmem:[%s2288_s19 + $0x38] sm:$0xff] (!%p441_p3)  ;;  %s2450_s13 = scalar_lea.vmem (!%p441_p3), [#allocation3], %s2395_s17  }
  0x5f   : > { %v573_v21 = vld [vmem:[%s2288_s19 + $0x8] sm:$0xff] (!%p441_p3)  ;;  %v2299_v25 = vld [vmem:[%s2288_s19 + $0x10] sm:$0xff] (!%p441_p3)  ;;  %v1506_v30 = vld [vmem:[%s2288_s19 + $0x40] sm:$0xff] (!%p441_p3) }
  0x60   : > { %s521_s23 = scalar_select %p520_p4, %s2283_s16, 4  ;;  %v588_v24 = vsub.f32 1.0, %v573_v21  ;;  %v1508_v26 = vld [vmem:[%s2288_s19 + $0x50] sm:$0xff]  ;;  %v596_v27 = vmul.f32 %v1501_v17, %v587_v20  ;;  %v608_v28 = vmul.f32 %v1504_v18, %v587_v20  ;;  %v1503_v29 = vld [vmem:[%s2288_s19 + $0x28] sm:$0xff]  ;;  %v620_v33 = vmul.f32 %v1507_v19, %v587_v20 }
  0x61   : > { %v2319_v37 = vsub.f32 1.0, %v2299_v25  ;;  %s781_s15 = ssub.s32 (%p2201_p5), 5, %s2283_s16  ;;  %s1543_s18 = smul.u32 (%p2201_p5), 24, %s2186_s24 }
  0x62   : > { %s1498_s20 = sshll.u32 %s521_s23, 3  ;;  %v597_v35 = vmul.f32 %v1502_v22, %v588_v24  ;;  %v609_v36 = vmul.f32 %v1505_v23, %v588_v24  ;;  %v621_v44 = vmul.f32 %v1508_v26, %v588_v24  ;;  %v1509_v26 = vld [vmem:[%s2288_s19 + $0x58] sm:$0xff]  ;;  %p782_p6 = scmp.lt.s32.totalorder (%p2201_p5), %s781_s15, 3 }
  0x63   : > { %s523_s30 = scalar_lea.vmem %s2553_s1, %s1498_s20  ;;  %s2308_s10 = scalar_lea.vmem %s2554_s2, %s1498_s20  ;;  %v598_v50 = vmul.f32 %v1503_v29, %v2319_v37  ;;  %v610_v55 = vmul.f32 %v1506_v30, %v2319_v37 }
  0x64   : > { %s2315_s14 = scalar_lea.vmem %s2555_s3, %s1498_s20  ;;  %v590_v31 = vld [vmem:[%s523_s30] sm:$0xff]  ;;  %v591_v34 = vld [vmem:[%s523_s30 + $0x8] sm:$0xff]  ;;  %v592_v54 = vld [vmem:[%s523_s30 + $0x10] sm:$0xff]  ;;  %s2471_s20 = scalar_lea.vmem (%p2201_p5), %s2556_s4, %s1543_s18  }
  0x65   : > { %v602_v32 = vld [vmem:[%s2308_s10] sm:$0xff]  ;;  %v593_v38 = vmul.f32 %v590_v31, %v572_v16  ;;  %v594_v41 = vmul.f32 %v591_v34, %v573_v21  ;;  %v603_v42 = vld [vmem:[%s2308_s10 + $0x8] sm:$0xff]  ;;  %v604_v60 = vld [vmem:[%s2308_s10 + $0x10] sm:$0xff]  ;;  %v595_v4 = vmul.f32 %v592_v54, %v2299_v25 }
  0x66   : > { %v605_v39 = vmul.f32 %v602_v32, %v572_v16  ;;  %v614_v40 = vld [vmem:[%s2315_s14] sm:$0xff]  ;;  %v615_v43 = vld [vmem:[%s2315_s14 + $0x8] sm:$0xff]  ;;  %v606_v46 = vmul.f32 %v603_v42, %v573_v21  ;;  %v607_v8 = vmul.f32 %v604_v60, %v2299_v25 }
  0x67   : > { %v617_v45 = vmul.f32 %v614_v40, %v572_v16  ;;  %v618_v47 = vmul.f32 %v615_v43, %v573_v21  ;;  %v2324_v48 = vadd.f32 %v596_v27, %v593_v38  ;;  %v2331_v52 = vadd.f32 %v597_v35, %v594_v41  ;;  %v616_v35 = vld [vmem:[%s2315_s14 + $0x10] sm:$0xff] }
  0x68   : > { %v2326_v49 = vadd.f32 %v608_v28, %v605_v39  ;;  %v2333_v53 = vadd.f32 %v609_v36, %v606_v46  ;;  %v2382_v34 = vadd.f32 %v610_v55, %v607_v8  ;;  %v622_v40 = vmul.f32 %v1509_v26, %v2319_v37 }
  0x69   : > { %v2329_v51 = vadd.f32 %v620_v33, %v617_v45  ;;  %v2341_v59 = vadd.f32 %v621_v44, %v618_v47  ;;  %v2345_v61 = vsub.f32 1.0, %v2324_v48  ;;  %v2370_v19 = vsub.f32 1.0, %v2331_v52 }
  0x6a   : > { %v2337_v56 = vsub.f32 1.0, %v2326_v49  ;;  %v635_v57 = vmul.f32 2.1e+10, %v2326_v49  ;;  %v662_v58 = vmul.f32 4.7619048e-11, %v2326_v49  ;;  %v2361_v11 = vsub.f32 1.0, %v2333_v53 }
  0x6b   : > { %v2348_v62 = vsub.f32 1.0, %v2329_v51  ;;  %v647_v63 = vmul.f32 2.2499999e+09, %v2329_v51  ;;  %v674_v0 = vmul.f32 4.4444445e-10, %v2329_v51  ;;  %v2364_v12 = vsub.f32 1.0, %v2341_v59 }
  0x6c   : > { %v638_v1 = vmul.f32 3.7e+10, %v2337_v56  ;;  %v665_v2 = vmul.f32 2.7027026e-11, %v2337_v56  ;;  %v701_v3 = vmul.f32 1e+10, %v2326_v49  ;;  %v2389_v43 = vadd.f32 %v598_v50, %v595_v4 }
  0x6d   : > { %v650_v5 = vmul.f32 40000000.0, %v2348_v62  ;;  %v677_v6 = vmul.f32 2.5e-08, %v2348_v62  ;;  %v704_v7 = vmul.f32 4.4000002e+10, %v2337_v56  ;;  %v619_v47 = vmul.f32 %v616_v35, %v2299_v25 }
  0x6e   : > { %v641_v9 = vadd.f32 %v638_v1, %v635_v57  ;;  %v668_v10 = vadd.f32 %v665_v2, %v662_v58  ;;  %v636_v16 = vmul.f32 2.1e+10, %v2333_v53  ;;  %v639_v20 = vmul.f32 3.7e+10, %v2361_v11 }
  0x6f   : > { %v653_v13 = vadd.f32 %v650_v5, %v647_v63  ;;  %v680_v14 = vadd.f32 %v677_v6, %v674_v0  ;;  %v707_v15 = vadd.f32 %v704_v7, %v701_v3  ;;  %v648_v23 = vmul.f32 2.2499999e+09, %v2341_v59 }
  0x70   : > { %v644_v17 = vmul.f32 %v641_v9, %v2345_v61  ;;  %v671_v18 = vmul.f32 %v668_v10, %v2345_v61  ;;  %v651_v24 = vmul.f32 40000000.0, %v2364_v12  ;;  %v663_v28 = vmul.f32 4.7619048e-11, %v2333_v53 }
  0x71   : > { %v683_v21 = vmul.f32 %v680_v14, %v2324_v48  ;;  %v710_v22 = vmul.f32 %v707_v15, %v2345_v61  ;;  %v656_v27 = vmul.f32 %v653_v13, %v2324_v48  ;;  %v666_v29 = vmul.f32 2.7027026e-11, %v2361_v11 }
  0x72   : > { %v675_v30 = vmul.f32 4.4444445e-10, %v2341_v59  ;;  %v642_v33 = vadd.f32 %v639_v20, %v636_v16  ;;  %v678_v38 = vmul.f32 2.5e-08, %v2364_v12  ;;  %v702_v39 = vmul.f32 1e+10, %v2333_v53 }
  0x73   : > { %v686_v31 = vadd.f32 %v683_v21, %v671_v18  ;;  %v713_v32 = vmul.f32 0.5, %v710_v22  ;;  %v669_v36 = vadd.f32 %v666_v29, %v663_v28  ;;  %v654_v41 = vadd.f32 %v651_v24, %v648_v23 }
  0x74   : > { %v705_v42 = vmul.f32 4.4000002e+10, %v2361_v11  ;;  %v659_v44 = vadd.f32 %v656_v27, %v644_v17  ;;  %v681_v46 = vadd.f32 %v678_v38, %v675_v30  ;;  %v645_v55 = vmul.f32 %v642_v33, %v2370_v19 }
  0x75   : > { %1837 = vrcp.f32 %v686_v31  ;;  %v672_v45 = vmul.f32 %v669_v36, %v2370_v19  ;;  %v2397_v54 = vmul.f32 0.6666667, %v713_v32  ;;  %v2401_v57 = vsub.f32 1.0, %v2382_v34 }
  0x76   : > { %v708_v37 = vadd.f32 %v705_v42, %v702_v39  ;;  %v684_v50 = vmul.f32 %v681_v46, %v2331_v52  ;;  %v625_v58 = vadd.f32 %v622_v40, %v619_v47  ;;  %v664_v60 = vmul.f32 4.7619048e-11, %v2382_v34 }
  0x77   : > { %v703_v63 = vmul.f32 1e+10, %v2382_v34  ;;  %v657_v25 = vmul.f32 %v654_v41, %v2331_v52  ;;  %v667_v1 = vmul.f32 2.7027026e-11, %v2401_v57  ;;  %v706_v2 = vmul.f32 4.4000002e+10, %v2401_v57 }
  0x78   : > { %v711_v0 = vmul.f32 %v708_v37, %v2370_v19  ;;  %v687_v3 = vadd.f32 %v684_v50, %v672_v45  ;;  %v2411_v4 = vsub.f32 1.0, %v2389_v43  ;;  %v634_v5 = vsub.f32 1.0, %v625_v58 }
  0x79   : > { %v676_v6 = vmul.f32 4.4444445e-10, %v625_v58  ;;  %v637_v7 = vmul.f32 2.1e+10, %v2382_v34  ;;  %v640_v8 = vmul.f32 3.7e+10, %v2401_v57  ;;  %v670_v9 = vadd.f32 %v667_v1, %v664_v60 }
  0x7a   : > { %v709_v10 = vadd.f32 %v706_v2, %v703_v63  ;;  %1839 = vrcp.f32 %v687_v3  ;;  %v714_v13 = vmul.f32 0.5, %v711_v0  ;;  %v679_v14 = vmul.f32 2.5e-08, %v634_v5 }
  0x7b   : > { %v756_v15 = vmul.f32 1e-06, %v713_v32  ;;  %v660_v16 = vadd.f32 %v657_v25, %v645_v55  ;;  %v649_v17 = vmul.f32 2.2499999e+09, %v625_v58  ;;  %v652_v18 = vmul.f32 40000000.0, %v634_v5 }
  0x7c   : > { %v712_v20 = vmul.f32 %v709_v10, %v2411_v4  ;;  %v673_v21 = vmul.f32 %v670_v9, %v2411_v4  ;;  %v682_v22 = vadd.f32 %v679_v14, %v676_v6  ;;  %v757_v23 = vmul.f32 1e-06, %v714_v13 }
  0x7d   : > { %759 = vst.msk [vmem:[%s2418_s21] sm:$0xff] %vm752_vm0, %v756_v15  ;;  %v716_v24 = vmul.f32 1000.0, %v2329_v51  ;;  %v719_v28 = vmul.f32 100.0, %v2348_v62  ;;  %v725_v29 = vmul.f32 2550.0, %v2326_v49  ;;  %v728_v30 = vmul.f32 2650.0, %v2337_v56 }
  0x7e   : > { %v715_v27 = vmul.f32 0.5, %v712_v20  ;;  %v643_v32 = vadd.f32 %v640_v8, %v637_v7  ;;  %v685_v33 = vmul.f32 %v682_v22, %v2389_v43  ;;  %760 = vst.msk [vmem:[%s2418_s21 + $0x8] sm:$0xff] %vm752_vm0, %v757_v23  ;;  %v717_v35 = vmul.f32 1000.0, %v2341_v59 }
  0x7f   : > { %v1838_v26 = vpop.eup %1837  ;;  %v744_v36 = vmul.f32 0.6666667, %v714_v13  ;;  %v722_v51 = vadd.f32 %v719_v28, %v716_v24  ;;  %v731_v39 = vadd.f32 %v728_v30, %v725_v29  ;;  %v655_v41 = vadd.f32 %v652_v18, %v649_v17 }
  0x80   : > { %v695_v31 = vadd.f32 %v1838_v26, %v659_v44  ;;  %v758_v38 = vmul.f32 1e-06, %v715_v27  ;;  %v688_v62 = vadd.f32 %v685_v33, %v673_v21  ;;  %v720_v42 = vmul.f32 100.0, %v2364_v12 }
  0x81   : > { %v734_v49 = vmul.f32 %v722_v51, %v2324_v48  ;;  %v737_v56 = vmul.f32 %v731_v39, %v2345_v61  ;;  %v726_v44 = vmul.f32 2550.0, %v2333_v53  ;;  %v729_v45 = vmul.f32 2650.0, %v2361_v11 }
  0x82   : > { %v698_v40 = vmul.f32 0.5, %v695_v31  ;;  %761 = vst.msk [vmem:[%s2418_s21 + $0x10] sm:$0xff] %vm752_vm0, %v758_v38  ;;  %1841 = vrcp.f32 %v688_v62  ;;  %v723_v46 = vadd.f32 %v720_v42, %v717_v35  ;;  %v718_v47 = vmul.f32 1000.0, %v625_v58 }
  0x83   : > { %v740_v55 = vadd.f32 %v737_v56, %v734_v49  ;;  %v732_v37 = vadd.f32 %v729_v45, %v726_v44  ;;  %v721_v12 = vmul.f32 100.0, %v634_v5  ;;  %v727_v50 = vmul.f32 2550.0, %v2382_v34 }
  0x84   : > { %v746_v59 = vsub.f32 %v698_v40, %v2397_v54  ;;  %v1840_v60 = vpop.eup %1839  ;;  %v646_v61 = vmul.f32 %v643_v32, %v2411_v4  ;;  %v735_v53 = vmul.f32 %v723_v46, %v2331_v52  ;;  %v730_v11 = vmul.f32 2650.0, %v2401_v57 }
  0x85   : > { %v696_v63 = vadd.f32 %v1840_v60, %v660_v16  ;;  %v658_v54 = vmul.f32 %v655_v41, %v2389_v43  ;;  %762 = vst.msk [vmem:[%s2444_s9] sm:$0xff] %vm752_vm0, %v740_v55  ;;  %v738_v34 = vmul.f32 %v732_v37, %v2370_v19  ;;  %v724_v58 = vadd.f32 %v721_v12, %v718_v47 }
  0x86   : > { %v749_v48 = vmul.f32 1e-06, %v746_v59  ;;  %v733_v52 = vadd.f32 %v730_v11, %v727_v50  ;;  %v745_v8 = vmul.f32 0.6666667, %v715_v27 }
  0x87   : > { %v699_v57 = vmul.f32 0.5, %v696_v63  ;;  %v741_v25 = vadd.f32 %v738_v34, %v735_v53  ;;  %v736_v0 = vmul.f32 %v724_v58, %v2389_v43  ;;  %v661_v3 = vadd.f32 %v658_v54, %v646_v61 }
  0x88   : > { %753 = vst.msk [vmem:[%s2450_s13] sm:$0xff] %vm752_vm0, %v749_v48  ;;  %v739_v1 = vmul.f32 %v733_v52, %v2411_v4 }
  0x89   : > { %v747_v2 = vsub.f32 %v699_v57, %v744_v36  ;;  %763 = vst.msk [vmem:[%s2444_s9 + $0x8] sm:$0xff] %vm752_vm0, %v741_v25 }
  0x8a   : > { %v742_v19 = vadd.f32 %v739_v1, %v736_v0 }
  0x8b   : > { %v750_v5 = vmul.f32 1e-06, %v747_v2 }
  0x8c   : > { %v1842_v6 = vpop.eup %1841  ;;  %764 = vst.msk [vmem:[%s2444_s9 + $0x10] sm:$0xff] %vm752_vm0, %v742_v19 }
  0x8d   : > { %754 = vst.msk [vmem:[%s2450_s13 + $0x8] sm:$0xff] %vm752_vm0, %v750_v5  ;;  %v697_v7 = vadd.f32 %v1842_v6, %v661_v3 }
  0x8f   : > { %v700_v9 = vmul.f32 0.5, %v697_v7  ;;  %779 = sbr.rel (!%p2201_p5) target bundleno = 211 (0xd3), region = 92 }
  0x91   : > { %v748_v10 = vsub.f32 %v700_v9, %v745_v8 }
  0x93   : > { %v751_v13 = vmul.f32 1e-06, %v748_v10 }
  0x95   : > { %755 = vst.msk [vmem:[%s2450_s13 + $0x10] sm:$0xff] %vm752_vm0, %v751_v13 }
  0x96   : > { %s2575_s15 = smov (!%p782_p6, %s781_s15), 3 }
  0x97   : > { %s1510_s26 = sshll.u32 %s2575_s15, 7 }
  0x98   : > { %p1513_p7 = scmp.eq.s32.totalorder %s1510_s26, 0 }
  0x99   : > { %1843 = sdivrem.u32 (!%p1513_p7), %s2575_s15, 3 }
  0x9a   : > { %790 = sbr.rel (%p1513_p7) target bundleno = 211 (0xd3), region = 96 }
  0xa2   : > { %s2477_s27 = spop.drf %1843 }
  0xa3   : > { %p1514_p8 = scmp.le.s32.totalorder %s2477_s27, 0 }
  0xa4   : > { %s2039_s30 = smov (!%p1514_p8), %s2471_s20   ;;  %s2043_s7 = smov (!%p1514_p8), %s2450_s13  }
  0xa5   : > { %1348 = sbr.rel (%p1514_p8) target bundleno = 182 (0xb6), region = 363  ;;  %s2047_s8 = smov (!%p1514_p8), 0  }
  0xa6   : > { %s2051_s10 = smov (!%p1514_p8), 0  }
  0xac LB: >> { %v858_v43 = vld [vmem:[%s2045_s7] sm:$0xff]  ;;  %v860_v4 = vld [vmem:[%s2045_s7 + $0x8] sm:$0xff]  ;;  %v862_v14 = vld [vmem:[%s2045_s7 + $0x10] sm:$0xff]  ;;  %s864_s11 = sadd.s32 1, %s2049_s8  ;;  %s852_s10 = sadd.s32 1, %s2053_s10   ;;  %s2053_s10 = sphi %s2051_s10, %s852_s10   ;;  %s2049_s8 = sphi %s2047_s8, %s2048_s8   ;;  %s2045_s7 = sphi %s2043_s7, %s869_s7   ;;  %s2041_s30 = sphi %s2039_s30, %s870_s30  }
  0xad   : >> { %859 = vst [vmem:[%s2041_s30] sm:$0xff] %v858_v43  ;;  %861 = vst [vmem:[%s2041_s30 + $0x8] sm:$0xff] %v860_v4  ;;  %p865_p9 = scmp.ge.s32.totalorder %s864_s11, %s2477_s27  ;;  %p851_p10 = scmp.ge.s32.totalorder %s852_s10, %s2477_s27 }
  0xae   : >> { %863 = vst [vmem:[%s2041_s30 + $0x10] sm:$0xff] %v862_v14 }
  0xaf   : >> { %s2577_s11 = smov (%p865_p9, %s864_s11), 0  ;;  %854 = sbr.rel (!%p851_p10) target bundleno = 172 (0xac), region = 369 }
  0xb0   : >> { %s867_s12 = smul.u32 24, %s2577_s11  ;;  %s2048_s8 = smov %s2577_s11  }
  0xb2   : >> { %s869_s7 = scalar_lea.vmem %s2450_s13, %s867_s12 [#allocation3]   ;;  %s870_s30 = scalar_lea.vmem %s2471_s20, %s867_s12  }
  0xb6 PF: > { %1845 = sdivrem.u32 %s2575_s15, 3 }
  0xb7   : > { %s1515_s14 = smul.u32 24, %s2477_s27 }
  0xb9   : > { %s875_s17 = scalar_lea.vmem %s2450_s13, %s1515_s14 [#allocation3]   ;;  %s877_s18 = scalar_lea.vmem %s2471_s20, %s1515_s14  }
  0xbf   : > { %s1846_s19 = spop.drf %1845 }
  0xc0   : > { %p1517_p11 = scmp.le.s32.totalorder %s1846_s19, 0 }
  0xc1   : > { %s2055_s23 = smov (!%p1517_p11), %s877_s18   ;;  %s2059_s26 = smov (!%p1517_p11), %s875_s17  }
  0xc2   : > { %1362 = sbr.rel (%p1517_p11) target bundleno = 211 (0xd3), region = 374  ;;  %s2063_s8 = smov (!%p1517_p11), 0  }
  0xc3   : > { %s2067_s30 = smov (!%p1517_p11), 0  }
  0xc9 LB: >> { %v887_v15 = vld [vmem:[%s2061_s26] sm:$0xff]  ;;  %s889_s7 = sadd.s32 1, %s2065_s8  ;;  %s881_s30 = sadd.s32 1, %s2069_s30   ;;  %s2069_s30 = sphi %s2067_s30, %s881_s30   ;;  %s2065_s8 = sphi %s2063_s8, %s2064_s8   ;;  %s2061_s26 = sphi %s2059_s26, %s894_s26   ;;  %s2057_s23 = sphi %s2055_s23, %s895_s23  }
  0xca   : >> { %888 = vst [vmem:[%s2057_s23] sm:$0xff] %v887_v15  ;;  %p890_p12 = scmp.ge.s32.totalorder %s889_s7, %s1846_s19  ;;  %p880_p13 = scmp.ge.s32.totalorder %s881_s30, %s1846_s19 }
  0xcc   : >> { %s2579_s7 = smov (%p890_p12, %s889_s7), 0  ;;  %883 = sbr.rel (!%p880_p13) target bundleno = 201 (0xc9), region = 380 }
  0xcd   : >> { %s1518_s13 = sshll.u32 %s2579_s7, 3  ;;  %s2064_s8 = smov %s2579_s7  }
  0xce   : >> { %s894_s26 = scalar_lea.vmem %s875_s17, %s1518_s13 [#allocation3]   ;;  %s895_s23 = scalar_lea.vmem %s877_s18, %s1518_s13  }
  0xd3 PF: > { %901 = sbr.rel (!%p2201_p5) target bundleno = 279 (0x117), region = 144  ;;  %s903_s15 = ssub.s32 (%p2201_p5), 5, %s2283_s16 }
  0xd4   : > { %s1544_s20 = smul.u32 (%p2201_p5), 24, %s2186_s24  ;;  %p904_p0 = scmp.lt.s32.totalorder (%p2201_p5), %s903_s15, 3 }
  0xd6   : > { %s2497_s11 = scalar_lea.vmem (%p2201_p5), %s2557_s5, %s1544_s20  }
  0xda   : > { %s2581_s15 = smov (!%p904_p0, %s903_s15), 3 }
  0xdb   : > { %s1520_s12 = sshll.u32 %s2581_s15, 7 }
  0xdc   : > { %p1523_p1 = scmp.eq.s32.totalorder %s1520_s12, 0 }
  0xdd   : > { %1847 = sdivrem.u32 (!%p1523_p1), %s2581_s15, 3 }
  0xde   : > { %912 = sbr.rel (%p1523_p1) target bundleno = 279 (0x117), region = 148 }
  0xe6   : > { %s2503_s14 = spop.drf %1847 }
  0xe7   : > { %p1524_p2 = scmp.le.s32.totalorder %s2503_s14, 0 }
  0xe8   : > { %s2071_s17 = smov (!%p1524_p2), %s2497_s11   ;;  %s2075_s18 = smov (!%p1524_p2), %s2418_s21  }
  0xe9   : > { %1376 = sbr.rel (%p1524_p2) target bundleno = 250 (0xfa), region = 385  ;;  %s2079_s19 = smov (!%p1524_p2), 0  }
  0xea   : > { %s2083_s23 = smov (!%p1524_p2), 0  }
  0xf0 LB: >> { %v980_v16 = vld [vmem:[%s2077_s18] sm:$0xff]  ;;  %v982_v17 = vld [vmem:[%s2077_s18 + $0x8] sm:$0xff]  ;;  %v984_v18 = vld [vmem:[%s2077_s18 + $0x10] sm:$0xff]  ;;  %s986_s26 = sadd.s32 1, %s2081_s19  ;;  %s974_s23 = sadd.s32 1, %s2085_s23   ;;  %s2085_s23 = sphi %s2083_s23, %s974_s23   ;;  %s2081_s19 = sphi %s2079_s19, %s2080_s19   ;;  %s2077_s18 = sphi %s2075_s18, %s991_s18   ;;  %s2073_s17 = sphi %s2071_s17, %s992_s17  }
  0xf1   : >> { %981 = vst [vmem:[%s2073_s17] sm:$0xff] %v980_v16  ;;  %983 = vst [vmem:[%s2073_s17 + $0x8] sm:$0xff] %v982_v17  ;;  %p987_p3 = scmp.ge.s32.totalorder %s986_s26, %s2503_s14  ;;  %p973_p4 = scmp.ge.s32.totalorder %s974_s23, %s2503_s14 }
  0xf2   : >> { %985 = vst [vmem:[%s2073_s17 + $0x10] sm:$0xff] %v984_v18 }
  0xf3   : >> { %s2583_s26 = smov (%p987_p3, %s986_s26), 0  ;;  %976 = sbr.rel (!%p973_p4) target bundleno = 240 (0xf0), region = 391 }
  0xf4   : >> { %s989_s8 = smul.u32 24, %s2583_s26  ;;  %s2080_s19 = smov %s2583_s26  }
  0xf6   : >> { %s991_s18 = scalar_lea.vmem %s2418_s21, %s989_s8 [#allocation4]   ;;  %s992_s17 = scalar_lea.vmem %s2497_s11, %s989_s8  }
  0xfa PF: > { %1849 = sdivrem.u32 %s2581_s15, 3 }
  0xfb   : > { %s1525_s30 = smul.u32 24, %s2503_s14 }
  0xfd   : > { %s997_s7 = scalar_lea.vmem %s2418_s21, %s1525_s30 [#allocation4]   ;;  %s999_s13 = scalar_lea.vmem %s2497_s11, %s1525_s30  }
 0x103   : > { %s1850_s20 = spop.drf %1849 }
 0x104   : > { %p1527_p6 = scmp.le.s32.totalorder %s1850_s20, 0 }
 0x105   : > { %s2087_s27 = smov (!%p1527_p6), %s999_s13   ;;  %s2091_s10 = smov (!%p1527_p6), %s997_s7  }
 0x106   : > { %1390 = sbr.rel (%p1527_p6) target bundleno = 279 (0x117), region = 396  ;;  %s2095_s12 = smov (!%p1527_p6), 0  }
 0x107   : > { %s2099_s17 = smov (!%p1527_p6), 0  }
 0x10d LB: >> { %v1009_v20 = vld [vmem:[%s2093_s10] sm:$0xff]  ;;  %s1011_s18 = sadd.s32 1, %s2097_s12  ;;  %s1003_s17 = sadd.s32 1, %s2101_s17   ;;  %s2101_s17 = sphi %s2099_s17, %s1003_s17   ;;  %s2097_s12 = sphi %s2095_s12, %s2096_s12   ;;  %s2093_s10 = sphi %s2091_s10, %s1016_s10   ;;  %s2089_s27 = sphi %s2087_s27, %s1017_s27  }
 0x10e   : >> { %1010 = vst [vmem:[%s2089_s27] sm:$0xff] %v1009_v20  ;;  %p1012_p7 = scmp.ge.s32.totalorder %s1011_s18, %s1850_s20  ;;  %p1002_p8 = scmp.ge.s32.totalorder %s1003_s17, %s1850_s20 }
 0x110   : >> { %s2585_s18 = smov (%p1012_p7, %s1011_s18), 0  ;;  %1005 = sbr.rel (!%p1002_p8) target bundleno = 269 (0x10d), region = 402 }
 0x111   : >> { %s1528_s21 = sshll.u32 %s2585_s18, 3  ;;  %s2096_s12 = smov %s2585_s18  }
 0x112   : >> { %s1016_s10 = scalar_lea.vmem %s997_s7, %s1528_s21 [#allocation4]   ;;  %s1017_s27 = scalar_lea.vmem %s999_s13, %s1528_s21  }
 0x117 PF: > { %1023 = sbr.rel (!%p2201_p5) target bundleno = 347 (0x15b), region = 196  ;;  %s1025_s15 = ssub.s32 (%p2201_p5), 5, %s2283_s16 }
 0x118   : > { %s1545_s11 = smul.u32 (%p2201_p5), 24, %s2186_s24  ;;  %p1026_p9 = scmp.lt.s32.totalorder (%p2201_p5), %s1025_s15, 3 }
 0x11a   : > { %s2523_s23 = scalar_lea.vmem (%p2201_p5), %s2558_s6, %s1545_s11  }
 0x11e   : > { %s2587_s15 = smov (!%p1026_p9, %s1025_s15), 3 }
 0x11f   : > { %s1530_s26 = sshll.u32 %s2587_s15, 7 }
 0x120   : > { %p1533_p10 = scmp.eq.s32.totalorder %s1530_s26, 0 }
 0x121   : > { %1851 = sdivrem.u32 (!%p1533_p10), %s2587_s15, 3 }
 0x122   : > { %1034 = sbr.rel (%p1533_p10) target bundleno = 347 (0x15b), region = 200 }
 0x12a   : > { %s2529_s29 = spop.drf %1851 }
 0x12b   : > { %p1534_p5 = scmp.le.s32.totalorder %s2529_s29, 0 }
 0x12c   : > { %s2103_s24 = smov (!%p1534_p5), %s2523_s23   ;;  %s2107_s16 = smov (!%p1534_p5), %s2444_s9  }
 0x12d   : > { %1404 = sbr.rel (%p1534_p5) target bundleno = 318 (0x13e), region = 407  ;;  %s2111_s8 = smov (!%p1534_p5), 0  }
 0x12e   : > { %s2115_s30 = smov (!%p1534_p5), 0  }
 0x134 LB: >> { %v1102_v21 = vld [vmem:[%s2109_s16] sm:$0xff]  ;;  %v1104_v22 = vld [vmem:[%s2109_s16 + $0x8] sm:$0xff]  ;;  %v1106_v23 = vld [vmem:[%s2109_s16 + $0x10] sm:$0xff]  ;;  %s1108_s7 = sadd.s32 1, %s2113_s8  ;;  %s1096_s30 = sadd.s32 1, %s2117_s30   ;;  %s2117_s30 = sphi %s2115_s30, %s1096_s30   ;;  %s2113_s8 = sphi %s2111_s8, %s2112_s8   ;;  %s2109_s16 = sphi %s2107_s16, %s1113_s16   ;;  %s2105_s24 = sphi %s2103_s24, %s1114_s24  }
 0x135   : >> { %1103 = vst [vmem:[%s2105_s24] sm:$0xff] %v1102_v21  ;;  %1105 = vst [vmem:[%s2105_s24 + $0x8] sm:$0xff] %v1104_v22  ;;  %p1109_p11 = scmp.ge.s32.totalorder %s1108_s7, %s2529_s29  ;;  %p1095_p12 = scmp.ge.s32.totalorder %s1096_s30, %s2529_s29 }
 0x136   : >> { %1107 = vst [vmem:[%s2105_s24 + $0x10] sm:$0xff] %v1106_v23 }
 0x137   : >> { %s2589_s7 = smov (%p1109_p11, %s1108_s7), 0  ;;  %1098 = sbr.rel (!%p1095_p12) target bundleno = 308 (0x134), region = 413 }
 0x138   : >> { %s1111_s13 = smul.u32 24, %s2589_s7  ;;  %s2112_s8 = smov %s2589_s7  }
 0x13a   : >> { %s1113_s16 = scalar_lea.vmem %s2444_s9, %s1111_s13 [#allocation5]   ;;  %s1114_s24 = scalar_lea.vmem %s2523_s23, %s1111_s13  }
 0x13e PF: > { %1853 = sdivrem.u32 %s2587_s15, 3 }
 0x13f   : > { %s1535_s20 = smul.u32 24, %s2529_s29 }
 0x141   : > { %s1119_s27 = scalar_lea.vmem %s2444_s9, %s1535_s20 [#allocation5]   ;;  %s1121_s10 = scalar_lea.vmem %s2523_s23, %s1535_s20  }
 0x147   : > { %s1854_s12 = spop.drf %1853 }
 0x148   : > { %p1537_p13 = scmp.le.s32.totalorder %s1854_s12, 0 }
 0x149   : > { %s2119_s17 = smov (!%p1537_p13), %s1121_s10   ;;  %s2123_s18 = smov (!%p1537_p13), %s1119_s27  }
 0x14a   : > { %1418 = sbr.rel (%p1537_p13) target bundleno = 347 (0x15b), region = 418  ;;  %s2127_s21 = smov (!%p1537_p13), 0  }
 0x14b   : > { %s2131_s11 = smov (!%p1537_p13), 0  }
 0x151 LB: >> { %v1131_v24 = vld [vmem:[%s2125_s18] sm:$0xff]  ;;  %s1133_s14 = sadd.s32 1, %s2129_s21  ;;  %s1125_s11 = sadd.s32 1, %s2133_s11   ;;  %s2133_s11 = sphi %s2131_s11, %s1125_s11   ;;  %s2129_s21 = sphi %s2127_s21, %s2128_s21   ;;  %s2125_s18 = sphi %s2123_s18, %s1138_s18   ;;  %s2121_s17 = sphi %s2119_s17, %s1139_s17  }
 0x152   : >> { %1132 = vst [vmem:[%s2121_s17] sm:$0xff] %v1131_v24  ;;  %p1134_p0 = scmp.ge.s32.totalorder %s1133_s14, %s1854_s12  ;;  %p1124_p1 = scmp.ge.s32.totalorder %s1125_s11, %s1854_s12 }
 0x154   : >> { %s2591_s14 = smov (%p1134_p0, %s1133_s14), 0  ;;  %1127 = sbr.rel (!%p1124_p1) target bundleno = 337 (0x151), region = 424 }
 0x155   : >> { %s1538_s9 = sshll.u32 %s2591_s14, 3  ;;  %s2128_s21 = smov %s2591_s14  }
 0x156   : >> { %s1138_s18 = scalar_lea.vmem %s1119_s27, %s1538_s9 [#allocation5]   ;;  %s1139_s17 = scalar_lea.vmem %s1121_s10, %s1538_s9  }
 0x15b PF: > { %p14_p2 = scmp.ge.s32.totalorder %s2189_s25, 4   ;;  %s2565_s21 = smov %s2001_s22 }
 0x15c   : > { %s2566_s22 = smov %s2199_s28  ;;  %s2567_s23 = smov %s2189_s25 }
 0x15d   :  { %16 = sbr.rel (!%p14_p2) target bundleno = 2 (0x2), region = 435 }

</bundles_post_ra>
